<compile_context>
chip_gen: v6e
topology: v6e:2x2x1
jax: 0.10.0
libtpu: 0.0.40
codegen_flags: <defaults>
</compile_context>

<pallas_src>
import jax
import jax.numpy as jnp
from jax.experimental import pallas as pl
from jax.experimental.pallas import tpu as pltpu

_SUBLANE = 8


def _round_up(x: int, m: int) -> int:
    return ((x + m - 1) // m) * m


def _physical_vmem_bytes() -> int:
    """Physical VMEM of the current chip; conservative fallback = v7x (64 MiB/TC)."""
    try:
        return int(pltpu.get_tpu_info().vmem_capacity_bytes)
    except Exception:
        return 64 * 1024 * 1024


def prepare_params(w, b, compute_dtype=jnp.bfloat16):
    """One-time (model-init) conversion of PyTorch-layout Linear parameters.

    w : (out_dim, in_dim)  ->  stored transposed as (in_dim, out_dim) in
                               compute_dtype (bf16 = native MXU input).
    b : (out_dim,)         ->  stored as (1, out_dim) float32 (added to the
                               f32 accumulator).
    """
    w_t = jnp.asarray(w).T.astype(compute_dtype)
    b_row = jnp.asarray(b).reshape(1, -1).astype(jnp.float32)
    return w_t, b_row


def _logreg_kernel(x_ref, w_ref, b_ref, o_ref):
    # MXU matmul in the compute dtype (bf16), f32 accumulation.
    x = x_ref[...].astype(w_ref.dtype)
    z = jnp.dot(x, w_ref[...], preferred_element_type=jnp.float32)
    z = z + b_ref[...]                      # (1, out_dim) broadcasts over rows
    # sigmoid(z) = 0.5 * tanh(0.5 * z) + 0.5  -> single EUP op, no overflow,
    # exact (no approx-reciprocal error).
    o_ref[...] = (0.5 * jnp.tanh(0.5 * z) + 0.5).astype(o_ref.dtype)


def logistic_regression(x, w_t, b_row, *, block_b: int = 512):
    """sigmoid(x @ w_t + b) == PyTorch nn.Linear + nn.Sigmoid forward.

    x     : (B, in_dim)          any float dtype (dtype preserved on output)
    w_t   : (in_dim, out_dim)    pre-transposed weight from prepare_params
    b_row : (1, out_dim)         float32 bias from prepare_params
    """
    B, in_dim = x.shape
    in_dim_w, out_dim = w_t.shape
    assert in_dim_w == in_dim, "weight/in_dim mismatch"
    assert b_row.shape == (1, out_dim), "bias must be prepared as (1, out_dim)"

    x_bytes = x.dtype.itemsize
    out_dtype = x.dtype
    out_bytes = x.dtype.itemsize
    w_nbytes = in_dim * out_dim * w_t.dtype.itemsize

    # ---- batch tile selection -------------------------------------------
    tb = min(block_b, _round_up(B, _SUBLANE))
    # For large batches keep >= ~8 grid steps (v7x megacore gets both TCs
    # busy and the pipeline overlaps prefetch of tile i+1 with compute of i).
    if B >= 1024:
        tb = min(tb, _round_up(-(-B // 8), _SUBLANE))
    tb = max(tb, _SUBLANE)

    # ---- shape-aware VMEM budget (v7x has only 64 MiB physical per TC) ----
    single_buffer_w = w_nbytes >= 4 * 1024 * 1024   # only worth it for big weights

    def est_vmem(t: int) -> int:
        x_buf = 2 * t * in_dim * x_bytes                    # double-buffered input
        o_buf = 2 * t * out_dim * out_bytes                 # double-buffered output
        w_buf = (1 if single_buffer_w else 2) * w_nbytes    # VMEM-resident weight
        return x_buf + o_buf + w_buf

    budget = (_physical_vmem_bytes() * 3) // 4              # leave compiler headroom
    while est_vmem(tb) > budget and tb > _SUBLANE:
        tb = max(_SUBLANE, _round_up(tb // 2, _SUBLANE))
    vmem_limit = int(min(budget, max(32 * 1024 * 1024, 2 * est_vmem(tb))))

    grid = (pl.cdiv(B, tb),)

    # Grid-invariant weight: when it is large, a second pipeline buffer is
    # pure VMEM waste -> single-buffer it.
    if single_buffer_w:
        w_spec = pl.BlockSpec((in_dim, out_dim), lambda i: (0, 0),
                              pipeline_mode=pl.Buffered(buffer_count=1))
    else:
        w_spec = pl.BlockSpec((in_dim, out_dim), lambda i: (0, 0))

    return pl.pallas_call(
        _logreg_kernel,
        out_shape=jax.ShapeDtypeStruct((B, out_dim), out_dtype),
        grid_spec=pltpu.PrefetchScalarGridSpec(
            num_scalar_prefetch=0,
            grid=grid,
            in_specs=[
                # x: one batch tile per grid step; full-extent feature dim
                # (no lane padding, no wrapper copy of x).
                pl.BlockSpec((tb, in_dim), lambda i: (i, 0)),
                # Weight & bias: grid-invariant -> stay resident in VMEM.
                w_spec,
                pl.BlockSpec((1, out_dim), lambda i: (0, 0)),
            ],
            # Partial last tile (B % tb != 0) is masked on writeback by Pallas.
            out_specs=pl.BlockSpec((tb, out_dim), lambda i: (i, 0)),
        ),
        compiler_params=pltpu.CompilerParams(
            # Batch tiles are independent -> shard across TCs on v7x megacore.
            dimension_semantics=("parallel",),
            vmem_limit_bytes=vmem_limit,
        ),
    )(x, w_t, b_row)


if __name__ == "__main__":
    # Small shapes consistent with the module: in_dim=32 features, out_dim=8 classes.
    batch, in_dim, out_dim = 8, 32, 8

    key = jax.random.PRNGKey(0)
    kx, kw, kb = jax.random.split(key, 3)

    # nn.Linear-style init: U(-1/sqrt(in_dim), 1/sqrt(in_dim)).
    bound = 1.0 / jnp.sqrt(jnp.float32(in_dim))
    w = jax.random.uniform(kw, (out_dim, in_dim), jnp.float32, -bound, bound)
    b = jax.random.uniform(kb, (out_dim,), jnp.float32, -bound, bound)
    x = jax.random.normal(kx, (batch, in_dim), jnp.float32)

    # One-time model-init parameter prep (transpose + bf16 cast), outside the
    # per-call hot path.
    w_t, b_row = prepare_params(w, b)

    out = logistic_regression(x, w_t, b_row)
    out = jax.block_until_ready(out)

    # Reference check (plain JAX, f32) to confirm semantics.
    ref = jax.nn.sigmoid(x @ w.T + b)
    assert out.shape == (batch, out_dim)
    assert out.dtype == x.dtype
    # bf16 matmul operands (f32 accumulation) -> small rounding error on z,
    # further damped by the sigmoid (|d sigma/dz| <= 0.25).
    max_err = jnp.max(jnp.abs(out.astype(jnp.float32) - ref))
    assert jnp.allclose(out.astype(jnp.float32), ref, atol=1e-2, rtol=1e-2), (
        f"max abs err = {max_err}")

    print("KERNEL_OK")
</pallas_src>

<mosaic_0001>
module attributes {stable_mosaic.version = 11 : i64} {
  func.func @_logreg_kernel(%arg0: i32, %arg1: memref<8x32xf32, #tpu.memory_space<vmem>>, %arg2: memref<32x8xbf16, #tpu.memory_space<vmem>>, %arg3: memref<1x8xf32, #tpu.memory_space<vmem>>, %arg4: memref<8x8xf32, #tpu.memory_space<vmem>>) attributes {dimension_semantics = [#tpu.dimension_semantics<parallel>], iteration_bounds = array<i64: 1>, scalar_prefetch = 0 : i64, scratch_operands = 0 : i64, tpu.core_type = #tpu.core_type<tc>, window_params = [{transform_indices = @transform_0, window_bounds = array<i64: 8, 32>}, {pipeline_mode = #tpu.pipeline_mode<synchronous>, transform_indices = @transform_1, window_bounds = array<i64: 32, 8>}, {pipeline_mode = #tpu.pipeline_mode<synchronous>, transform_indices = @transform_2, window_bounds = array<i64: 1, 8>}, {transform_indices = @transform_3, window_bounds = array<i64: 8, 8>}]} {
    %c0 = arith.constant 0 : index
    %c0_0 = arith.constant 0 : index
    %0 = vector.load %arg1[%c0, %c0_0] : memref<8x32xf32, #tpu.memory_space<vmem>>, vector<8x32xf32>
    %1 = arith.truncf %0 : vector<8x32xf32> to vector<8x32xbf16>
    %c0_1 = arith.constant 0 : index
    %c0_2 = arith.constant 0 : index
    %2 = vector.load %arg2[%c0_1, %c0_2] : memref<32x8xbf16, #tpu.memory_space<vmem>>, vector<32x8xbf16>
    %cst = arith.constant dense<0.000000e+00> : vector<8x8xf32>
    %3 = tpu.matmul %1, %2, %cst {dimension_numbers = #tpu.dot_dimension_numbers<[1], [0], [0], [1], [0, 0, 1, 1], [], []>} : vector<8x32xbf16>, vector<32x8xbf16>, vector<8x8xf32> -> vector<8x8xf32>
    %c0_3 = arith.constant 0 : index
    %c0_4 = arith.constant 0 : index
    %4 = vector.load %arg3[%c0_3, %c0_4] : memref<1x8xf32, #tpu.memory_space<vmem>>, vector<1x8xf32>
    %5 = vector.broadcast %4 : vector<1x8xf32> to vector<8x8xf32>
    %6 = arith.addf %3, %5 : vector<8x8xf32>
    %cst_5 = arith.constant 5.000000e-01 : f32
    %7 = vector.broadcast %cst_5 : f32 to vector<8x8xf32>
    %8 = arith.mulf %7, %6 : vector<8x8xf32>
    %9 = math.tanh %8 : vector<8x8xf32>
    %cst_6 = arith.constant 5.000000e-01 : f32
    %10 = vector.broadcast %cst_6 : f32 to vector<8x8xf32>
    %11 = arith.mulf %10, %9 : vector<8x8xf32>
    %cst_7 = arith.constant 5.000000e-01 : f32
    %12 = vector.broadcast %cst_7 : f32 to vector<8x8xf32>
    %13 = arith.addf %11, %12 : vector<8x8xf32>
    %c0_8 = arith.constant 0 : index
    %c0_9 = arith.constant 0 : index
    %14 = vector.load %arg4[%c0_8, %c0_9] : memref<8x8xf32, #tpu.memory_space<vmem>>, vector<8x8xf32>
    tpu.vector_store %arg4[%c0_8, %c0_9], %13 {strides = array<i32>} : memref<8x8xf32, #tpu.memory_space<vmem>>, vector<8x8xf32>,
    return
  }
  func.func @transform_0(%arg0: i32) -> (i32, i32) {
    %c0_i32 = arith.constant 0 : i32
    %c0_i32_0 = arith.constant 0 : i32
    return %arg0, %c0_i32 : i32, i32
  }
  func.func @transform_1(%arg0: i32) -> (i32, i32) {
    %c0_i32 = arith.constant 0 : i32
    %c0_i32_0 = arith.constant 0 : i32
    %c0_i32_1 = arith.constant 0 : i32
    return %c0_i32, %c0_i32_0 : i32, i32
  }
  func.func @transform_2(%arg0: i32) -> (i32, i32) {
    %c0_i32 = arith.constant 0 : i32
    %c0_i32_0 = arith.constant 0 : i32
    %c0_i32_1 = arith.constant 0 : i32
    return %c0_i32, %c0_i32_0 : i32, i32
  }
  func.func @transform_3(%arg0: i32) -> (i32, i32) {
    %c0_i32 = arith.constant 0 : i32
    %c0_i32_0 = arith.constant 0 : i32
    return %arg0, %c0_i32 : i32, i32
  }
}

</mosaic_0001>

<bundles_post_ra>
// kernel: tpu_custom_call.1
= control target key start
LH: loop header
LB: loop body
LE: loop exit
PB: predicated region body
PF: predicated region fallthrough
CT: control target
= control target key end

     0   :  { %v149_v1 = vmov 0.0   ;;  %vm150_vm0 = vmmov 0   ;;  %s187_s0 = inlined_call_operand.vmem [shape: f32[8,32], index: 0, kind: input, shape index: {}]   ;;  %s188_s1 = inlined_call_operand.vmem [shape: bf16[32,8], index: 1, kind: input, shape index: {}]   ;;  %s189_s2 = inlined_call_operand.vmem [shape: f32[1,8], index: 2, kind: input, shape index: {}]   ;;  %s190_s3 = inlined_call_operand.hbm [shape: f32[8,8], index: 3, kind: output, shape index: {}]  }
   0x1   :  { %v123_v0 = vld [vmem:[%s188_s1 + $0x8] sm:$0xff]   ;;  %112 = vmatprep.subr.bf16.mxu0 %v149_v1  ;;  %v124_v2 = vld [vmem:[%s188_s1] sm:$0xff]   ;;  %116 = vmatprep.mubr.msk.bf16.mxu0 %vm150_vm0, %v149_v1 }
   0x2   :  { %113 = vmatpush3.bf16.msra.mxu0 %v123_v0  ;;  %v16_v3 = vld [vmem:[%s187_s0] sm:$0xff] }
   0x3   :  { %8 = vsyncpa [#allocation3], 0  ;;  %114 = vmatprep.subr.bf16.mxu0 %v149_v1  ;;  %v17_v4 = vpack.c.bf16 %v16_v3, %v16_v3  ;;  %vm41_vm1 = vcmask 261120   ;;  %v105_v5 = vld [vmem:[%s189_s2] ss:$0 sm:$0xff]  ;;  %s151_s1 = smov [#allocation2]  }
   0x4   :  { %s97_s0 = sshll.u32 %s151_s1, 4  ;;  %vm89_vm2 = vcmask 64512   ;;  %s98_s0 = int_to_ptr.vmem [resolvable:$true] %s97_s0 }
   0x5   :  { %s127_s20 = scalar_lea.vmem %s98_s0, 128  ;;  %p132_p1 = scmp.lt.s32.totalorder %s98_s0, %s98_s0 }
   0x6   :  { %115 = vmatpush3.bf16.msra.mxu0 %v124_v2  ;;  %p128_p0 = scmp.ne.s32.totalorder %s98_s0, %s127_s20  ;;  %p133_p2 = scmp.lt.s32.totalorder %s127_s20, %s127_s20 }
   0x8   :  { %p134_p3 = por %p133_p2, %p132_p1 }
   0x9   :  { %117 = vmatmul.mubr.msk.bf16.vlgmr.msra.gmra.mxu0 %vm41_vm1, %v17_v4 }
   0xa   :  { %p135_p4 = pnand %p134_p3, %p128_p0 }
  0xc9   :  { %v79_v6 = vpop.f32.mrf.mxu0 }
  0xca   :  { %v80_v7 = vadd.f32 %v105_v5, %v79_v6 }
  0xcb   :  { %v118_v8 = vpop.f32.mrf.mxu0 }
  0xcc   :  { %v85_v9 = vmul.f32 0.5, %v80_v7 }
  0xcd   :  { %v82_v10 = vpop.f32.mrf.mxu0 }
  0xce   :  { %125 = vtanh.f32 %v85_v9 }
  0xcf   :  { %v119_v11 = vpop.f32.mrf.mxu0 }
  0xdb   :  { %v126_v12 = vpop.eup %125 }
  0xdc   :  { %v87_v13 = vmul.f32 0.5, %v126_v12 }
  0xde   :  { %v88_v14 = vadd.f32 0.5, %v87_v13 }
  0xe0   :  { %90 = vst.msk [vmem:[#allocation2] sm:$0xff] %vm89_vm2, %v88_v14 }
  0xe1   :  { %138 = shalt.err (!%p135_p4)
}
  0xe2   :  { %100 = dma.vmem_to_hbm [thread:$0]  %s98_s0, 128, %s190_s3, [#allocation3]  }
  0xe3   :  { %147 = dma.done.wait [#allocation3], 128  }
  0xe4   :  { %148 = vsyncadd [#allocation3], 4294967168 }
  0xe5   :  { %104 = vsyncpa [#allocation3], 1 }

</bundles_post_ra>
